<compile_context>
chip_gen: v7x
topology: tpu7x:2x2x1
jax: 0.10.0
libtpu: 0.0.40
codegen_flags: <defaults>
</compile_context>

<pallas_src>
import functools

import jax
import jax.numpy as jnp
from jax.experimental import pallas as pl
from jax.experimental.pallas import tpu as pltpu


_LANE = 128   # lane width: make the channel (last) dim a multiple of this
_CIN_PAD = 8  # pad the xyz input channel dim 3 -> 8 (one full sublane)


def _round_up(a, b):
    return (a + b - 1) // b * b


# ----------------------------------------------------------------------------
# Pallas kernel: 5 chained point-wise matmuls (+bias), ReLU after the first 4.
# Weights/biases are VMEM-resident (constant index_map); only x / out tiles
# stream over the grid.
# ----------------------------------------------------------------------------
def _supsegs_kernel(x_ref,
                    w1_ref, b1_ref,
                    w2_ref, b2_ref,
                    w3_ref, b3_ref,
                    w4_ref, b4_ref,
                    wf_ref, bf_ref,
                    o_ref, *, compute_dtype):
    cd = compute_dtype

    def layer(h, w_ref, b_ref, relu):
        # bf16 (or fp32) MXU inputs, fp32 accumulation; bias/ReLU stay fp32.
        out = jnp.dot(h.astype(cd), w_ref[...].astype(cd),
                      preferred_element_type=jnp.float32) + b_ref[...]
        return jnp.maximum(out, 0.0) if relu else out

    h = x_ref[...]                      # (tile, CIN_PAD) fp32
    h = layer(h, w1_ref, b1_ref, True)  # conv1 + bn1 + relu
    h = layer(h, w2_ref, b2_ref, True)  # conv2 + bn2 + relu
    h = layer(h, w3_ref, b3_ref, True)  # conv3 + bn3 + relu
    h = layer(h, w4_ref, b4_ref, True)  # conv4 + bn4 + relu
    h = layer(h, wf_ref, bf_ref, False)  # fc (no relu)
    o_ref[...] = h.astype(o_ref.dtype)   # lane-dense (tile, dim_pad) store


def _const_spec(shape):
    # whole array resident in VMEM, same block for every grid step
    return pl.BlockSpec(shape, lambda i: tuple(0 for _ in shape))


@functools.partial(jax.jit, static_argnames=("tile_m", "compute_dtype"))
def supsegs_encoder_pallas(x, params, tile_m=1024, compute_dtype=jnp.float32):
    """x: (B, N, 3) float32 -> (B, N, dim) float32."""
    B, N, cin = x.shape
    dim = params["w1"].shape[1]
    dim_pad = _round_up(dim, _LANE)
    cin_pad = _CIN_PAD

    M = B * N
    # Large tiles to amortize ~0.35 us/step grid overhead, but keep the grid
    # length >= 2 when possible so both v7x TensorCores get a share.
    tile = min(int(tile_m), _round_up(max(pl.cdiv(M, 2), 8), 8))
    M_pad = _round_up(M, tile)
    grid = M_pad // tile

    # Pad points to M_pad rows and channels 3 -> 8 (zeros).
    x2d = jnp.pad(x.reshape(M, cin).astype(jnp.float32),
                  ((0, M_pad - M), (0, cin_pad - cin)))

    def pad_w(a, rows, cols):
        return jnp.pad(a, ((0, rows - a.shape[0]), (0, cols - a.shape[1])))

    # Zero-padded channels: padded weight rows/cols and biases are 0, so padded
    # lanes stay exactly 0 through every layer and never affect real channels.
    w1 = pad_w(params["w1"], cin_pad, dim_pad); b1 = pad_w(params["b1"], 1, dim_pad)
    w2 = pad_w(params["w2"], dim_pad, dim_pad); b2 = pad_w(params["b2"], 1, dim_pad)
    w3 = pad_w(params["w3"], dim_pad, dim_pad); b3 = pad_w(params["b3"], 1, dim_pad)
    w4 = pad_w(params["w4"], dim_pad, dim_pad); b4 = pad_w(params["b4"], 1, dim_pad)
    wf = pad_w(params["wf"], dim_pad, dim_pad); bf = pad_w(params["bf"], 1, dim_pad)

    in_specs = [
        pl.BlockSpec((tile, cin_pad), lambda i: (i, 0)),         # x tile
        _const_spec((cin_pad, dim_pad)), _const_spec((1, dim_pad)),  # w1, b1
        _const_spec((dim_pad, dim_pad)), _const_spec((1, dim_pad)),  # w2, b2
        _const_spec((dim_pad, dim_pad)), _const_spec((1, dim_pad)),  # w3, b3
        _const_spec((dim_pad, dim_pad)), _const_spec((1, dim_pad)),  # w4, b4
        _const_spec((dim_pad, dim_pad)), _const_spec((1, dim_pad)),  # wf, bf
    ]

    # VMEM budget: double-buffered x/out tiles + (double-buffered) weights +
    # headroom for a few fp32 intermediates of shape (tile, dim_pad).
    bytes_act = 2 * 4 * tile * (cin_pad + dim_pad)
    bytes_wgt = 2 * 4 * ((cin_pad + 4 * dim_pad) * dim_pad + 5 * dim_pad)
    bytes_tmp = 4 * 4 * tile * dim_pad
    vmem_limit = min(bytes_act + bytes_wgt + bytes_tmp + (8 << 20), 40 << 20)

    flops = 2 * M_pad * dim_pad * (cin_pad + 4 * dim_pad)
    bytes_accessed = 4 * (M_pad * (cin_pad + dim_pad)
                          + (cin_pad + 4 * dim_pad) * dim_pad + 5 * dim_pad)

    out = pl.pallas_call(
        functools.partial(_supsegs_kernel, compute_dtype=compute_dtype),
        out_shape=jax.ShapeDtypeStruct((M_pad, dim_pad), jnp.float32),
        grid_spec=pltpu.PrefetchScalarGridSpec(
            num_scalar_prefetch=0,
            grid=(grid,),
            in_specs=in_specs,
            out_specs=pl.BlockSpec((tile, dim_pad), lambda i: (i, 0)),
        ),
        compiler_params=pltpu.CompilerParams(
            dimension_semantics=("parallel",),
            vmem_limit_bytes=vmem_limit),
        cost_estimate=pl.CostEstimate(
            flops=flops, transcendentals=0, bytes_accessed=bytes_accessed),
    )(x2d,
      w1, b1, w2, b2, w3, b3, w4, b4, wf, bf)

    return out[:M, :dim].reshape(B, N, dim)


# ----------------------------------------------------------------------------
# Parameter construction (deterministic) + conv/BN folding (plain-JAX glue).
# ----------------------------------------------------------------------------
def _fold_conv_bn(w, b, gamma, beta, mean, var, eps=1e-5):
    """Fold Conv1d(k=1) [w: (Cout, Cin), b: (Cout,)] with eval-mode BN.

    Returns (w_eff, b_eff) with y = x @ w_eff + b_eff for x of shape (*, Cin),
    matching BN(conv(x)) per channel.
    """
    s = gamma / jnp.sqrt(var + eps)                             # (Cout,)
    w_eff = (w * s[:, None]).T                                  # (Cin, Cout)
    b_eff = (b - mean) * s + beta                               # (Cout,)
    return w_eff.astype(jnp.float32), b_eff.reshape(1, -1).astype(jnp.float32)


def make_params(key, dim):
    keys = jax.random.split(key, 30)
    k = iter(keys)

    def conv_w(cin, cout):
        bound = 1.0 / jnp.sqrt(cin)
        return jax.random.uniform(next(k), (cout, cin), jnp.float32, -bound, bound)

    def conv_b(cin, cout):
        bound = 1.0 / jnp.sqrt(cin)
        return jax.random.uniform(next(k), (cout,), jnp.float32, -bound, bound)

    def bn(cout):
        gamma = 1.0 + 0.1 * jax.random.normal(next(k), (cout,), jnp.float32)
        beta = 0.1 * jax.random.normal(next(k), (cout,), jnp.float32)
        mean = 0.1 * jax.random.normal(next(k), (cout,), jnp.float32)
        var = jax.nn.softplus(jax.random.normal(next(k), (cout,), jnp.float32)) + 0.5
        return gamma, beta, mean, var

    params = {}
    cins = [3, dim, dim, dim]
    for li, cin in enumerate(cins, start=1):
        w = conv_w(cin, dim)
        b = conv_b(cin, dim)
        gamma, beta, mean, var = bn(dim)
        we, be = _fold_conv_bn(w, b, gamma, beta, mean, var)
        params[f"w{li}"] = we
        params[f"b{li}"] = be

    wf = conv_w(dim, dim)
    bf = conv_b(dim, dim)
    params["wf"] = wf.T.astype(jnp.float32)
    params["bf"] = bf.reshape(1, -1).astype(jnp.float32)
    return params


# ----------------------------------------------------------------------------
# Pure-JAX reference (same folded, UNPADDED params) for a correctness check.
# ----------------------------------------------------------------------------
def supsegs_encoder_ref(x, params):
    B, N, cin = x.shape
    h = x.reshape(B * N, cin)
    h = jnp.maximum(h @ params["w1"] + params["b1"], 0.0)
    h = jnp.maximum(h @ params["w2"] + params["b2"], 0.0)
    h = jnp.maximum(h @ params["w3"] + params["b3"], 0.0)
    h = jnp.maximum(h @ params["w4"] + params["b4"], 0.0)
    h = h @ params["wf"] + params["bf"]
    return h.reshape(B, N, -1)


if __name__ == "__main__":
    key = jax.random.PRNGKey(0)
    kx, kp = jax.random.split(key)

    B, N, DIM = 2, 128, 32                  # x: (batch, n_points, 3)
    x = jax.random.normal(kx, (B, N, 3), jnp.float32)
    params = make_params(kp, DIM)

    ref = supsegs_encoder_ref(x, params)

    # fp32 path (default; bit-accurate parity, also the v5e path).
    out = supsegs_encoder_pallas(x, params)
    out = jax.block_until_ready(out)
    assert out.shape == (B, N, DIM)
    assert jnp.allclose(out, ref, atol=1e-5, rtol=1e-5), "fp32 mismatch vs reference"

    # bf16-input / f32-accumulate MXU path (v6e/v7x fast path); loose smoke check.
    out_bf16 = supsegs_encoder_pallas(x, params, compute_dtype=jnp.bfloat16)
    out_bf16 = jax.block_until_ready(out_bf16)
    assert out_bf16.shape == (B, N, DIM)
    assert float(jnp.max(jnp.abs(out_bf16 - ref))) < 0.5, "bf16 path diverged"

    print("KERNEL_OK")
</pallas_src>

<mosaic_0001>
module attributes {stable_mosaic.version = 11 : i64} {
  func.func @_supsegs_kernel(%arg0: i32, %arg1: memref<128x8xf32, #tpu.memory_space<vmem>>, %arg2: memref<8x128xf32, #tpu.memory_space<vmem>>, %arg3: memref<1x128xf32, #tpu.memory_space<vmem>>, %arg4: memref<128x128xf32, #tpu.memory_space<vmem>>, %arg5: memref<1x128xf32, #tpu.memory_space<vmem>>, %arg6: memref<128x128xf32, #tpu.memory_space<vmem>>, %arg7: memref<1x128xf32, #tpu.memory_space<vmem>>, %arg8: memref<128x128xf32, #tpu.memory_space<vmem>>, %arg9: memref<1x128xf32, #tpu.memory_space<vmem>>, %arg10: memref<128x128xf32, #tpu.memory_space<vmem>>, %arg11: memref<1x128xf32, #tpu.memory_space<vmem>>, %arg12: memref<128x128xf32, #tpu.memory_space<vmem>>) attributes {dimension_semantics = [#tpu.dimension_semantics<parallel>], iteration_bounds = array<i64: 2>, scalar_prefetch = 0 : i64, scratch_operands = 0 : i64, tpu.core_type = #tpu.core_type<tc>, window_params = [{transform_indices = @transform_0, window_bounds = array<i64: 128, 8>}, {pipeline_mode = #tpu.pipeline_mode<synchronous>, transform_indices = @transform_1, window_bounds = array<i64: 8, 128>}, {pipeline_mode = #tpu.pipeline_mode<synchronous>, transform_indices = @transform_2, window_bounds = array<i64: 1, 128>}, {pipeline_mode = #tpu.pipeline_mode<synchronous>, transform_indices = @transform_3, window_bounds = array<i64: 128, 128>}, {pipeline_mode = #tpu.pipeline_mode<synchronous>, transform_indices = @transform_4, window_bounds = array<i64: 1, 128>}, {pipeline_mode = #tpu.pipeline_mode<synchronous>, transform_indices = @transform_5, window_bounds = array<i64: 128, 128>}, {pipeline_mode = #tpu.pipeline_mode<synchronous>, transform_indices = @transform_6, window_bounds = array<i64: 1, 128>}, {pipeline_mode = #tpu.pipeline_mode<synchronous>, transform_indices = @transform_7, window_bounds = array<i64: 128, 128>}, {pipeline_mode = #tpu.pipeline_mode<synchronous>, transform_indices = @transform_8, window_bounds = array<i64: 1, 128>}, {pipeline_mode = #tpu.pipeline_mode<synchronous>, transform_indices = @transform_9, window_bounds = array<i64: 128, 128>}, {pipeline_mode = #tpu.pipeline_mode<synchronous>, transform_indices = @transform_10, window_bounds = array<i64: 1, 128>}, {transform_indices = @transform_11, window_bounds = array<i64: 128, 128>}]} {
    %c0 = arith.constant 0 : index
    %c0_0 = arith.constant 0 : index
    %0 = vector.load %arg1[%c0, %c0_0] : memref<128x8xf32, #tpu.memory_space<vmem>>, vector<128x8xf32>
    %c0_1 = arith.constant 0 : index
    %c0_2 = arith.constant 0 : index
    %1 = vector.load %arg2[%c0_1, %c0_2] : memref<8x128xf32, #tpu.memory_space<vmem>>, vector<8x128xf32>
    %cst = arith.constant dense<0.000000e+00> : vector<128x128xf32>
    %2 = tpu.matmul %0, %1, %cst {dimension_numbers = #tpu.dot_dimension_numbers<[1], [0], [0], [1], [0, 0, 1, 1], [], []>} : vector<128x8xf32>, vector<8x128xf32>, vector<128x128xf32> -> vector<128x128xf32>
    %c0_3 = arith.constant 0 : index
    %c0_4 = arith.constant 0 : index
    %3 = vector.load %arg3[%c0_3, %c0_4] : memref<1x128xf32, #tpu.memory_space<vmem>>, vector<1x128xf32>
    %4 = vector.broadcast %3 : vector<1x128xf32> to vector<128x128xf32>
    %5 = arith.addf %2, %4 : vector<128x128xf32>
    %cst_5 = arith.constant 0.000000e+00 : f32
    %6 = vector.broadcast %cst_5 : f32 to vector<128x128xf32>
    %7 = arith.maximumf %5, %6 : vector<128x128xf32>
    %c0_6 = arith.constant 0 : index
    %c0_7 = arith.constant 0 : index
    %8 = vector.load %arg4[%c0_6, %c0_7] : memref<128x128xf32, #tpu.memory_space<vmem>>, vector<128x128xf32>
    %cst_8 = arith.constant dense<0.000000e+00> : vector<128x128xf32>
    %9 = tpu.matmul %7, %8, %cst_8 {dimension_numbers = #tpu.dot_dimension_numbers<[1], [0], [0], [1], [0, 0, 1, 1], [], []>} : vector<128x128xf32>, vector<128x128xf32>, vector<128x128xf32> -> vector<128x128xf32>
    %c0_9 = arith.constant 0 : index
    %c0_10 = arith.constant 0 : index
    %10 = vector.load %arg5[%c0_9, %c0_10] : memref<1x128xf32, #tpu.memory_space<vmem>>, vector<1x128xf32>
    %11 = vector.broadcast %10 : vector<1x128xf32> to vector<128x128xf32>
    %12 = arith.addf %9, %11 : vector<128x128xf32>
    %cst_11 = arith.constant 0.000000e+00 : f32
    %13 = vector.broadcast %cst_11 : f32 to vector<128x128xf32>
    %14 = arith.maximumf %12, %13 : vector<128x128xf32>
    %c0_12 = arith.constant 0 : index
    %c0_13 = arith.constant 0 : index
    %15 = vector.load %arg6[%c0_12, %c0_13] : memref<128x128xf32, #tpu.memory_space<vmem>>, vector<128x128xf32>
    %cst_14 = arith.constant dense<0.000000e+00> : vector<128x128xf32>
    %16 = tpu.matmul %14, %15, %cst_14 {dimension_numbers = #tpu.dot_dimension_numbers<[1], [0], [0], [1], [0, 0, 1, 1], [], []>} : vector<128x128xf32>, vector<128x128xf32>, vector<128x128xf32> -> vector<128x128xf32>
    %c0_15 = arith.constant 0 : index
    %c0_16 = arith.constant 0 : index
    %17 = vector.load %arg7[%c0_15, %c0_16] : memref<1x128xf32, #tpu.memory_space<vmem>>, vector<1x128xf32>
    %18 = vector.broadcast %17 : vector<1x128xf32> to vector<128x128xf32>
    %19 = arith.addf %16, %18 : vector<128x128xf32>
    %cst_17 = arith.constant 0.000000e+00 : f32
    %20 = vector.broadcast %cst_17 : f32 to vector<128x128xf32>
    %21 = arith.maximumf %19, %20 : vector<128x128xf32>
    %c0_18 = arith.constant 0 : index
    %c0_19 = arith.constant 0 : index
    %22 = vector.load %arg8[%c0_18, %c0_19] : memref<128x128xf32, #tpu.memory_space<vmem>>, vector<128x128xf32>
    %cst_20 = arith.constant dense<0.000000e+00> : vector<128x128xf32>
    %23 = tpu.matmul %21, %22, %cst_20 {dimension_numbers = #tpu.dot_dimension_numbers<[1], [0], [0], [1], [0, 0, 1, 1], [], []>} : vector<128x128xf32>, vector<128x128xf32>, vector<128x128xf32> -> vector<128x128xf32>
    %c0_21 = arith.constant 0 : index
    %c0_22 = arith.constant 0 : index
    %24 = vector.load %arg9[%c0_21, %c0_22] : memref<1x128xf32, #tpu.memory_space<vmem>>, vector<1x128xf32>
    %25 = vector.broadcast %24 : vector<1x128xf32> to vector<128x128xf32>
    %26 = arith.addf %23, %25 : vector<128x128xf32>
    %cst_23 = arith.constant 0.000000e+00 : f32
    %27 = vector.broadcast %cst_23 : f32 to vector<128x128xf32>
    %28 = arith.maximumf %26, %27 : vector<128x128xf32>
    %c0_24 = arith.constant 0 : index
    %c0_25 = arith.constant 0 : index
    %29 = vector.load %arg10[%c0_24, %c0_25] : memref<128x128xf32, #tpu.memory_space<vmem>>, vector<128x128xf32>
    %cst_26 = arith.constant dense<0.000000e+00> : vector<128x128xf32>
    %30 = tpu.matmul %28, %29, %cst_26 {dimension_numbers = #tpu.dot_dimension_numbers<[1], [0], [0], [1], [0, 0, 1, 1], [], []>} : vector<128x128xf32>, vector<128x128xf32>, vector<128x128xf32> -> vector<128x128xf32>
    %c0_27 = arith.constant 0 : index
    %c0_28 = arith.constant 0 : index
    %31 = vector.load %arg11[%c0_27, %c0_28] : memref<1x128xf32, #tpu.memory_space<vmem>>, vector<1x128xf32>
    %32 = vector.broadcast %31 : vector<1x128xf32> to vector<128x128xf32>
    %33 = arith.addf %30, %32 : vector<128x128xf32>
    %c0_29 = arith.constant 0 : index
    %c0_30 = arith.constant 0 : index
    %34 = vector.load %arg12[%c0_29, %c0_30] : memref<128x128xf32, #tpu.memory_space<vmem>>, vector<128x128xf32>
    tpu.vector_store %arg12[%c0_29, %c0_30], %33 {strides = array<i32>} : memref<128x128xf32, #tpu.memory_space<vmem>>, vector<128x128xf32>,
    return
  }
  func.func @transform_0(%arg0: i32) -> (i32, i32) {
    %c0_i32 = arith.constant 0 : i32
    %c0_i32_0 = arith.constant 0 : i32
    return %arg0, %c0_i32 : i32, i32
  }
  func.func @transform_1(%arg0: i32) -> (i32, i32) {
    %c0_i32 = arith.constant 0 : i32
    %c0_i32_0 = arith.constant 0 : i32
    %c0_i32_1 = arith.constant 0 : i32
    return %c0_i32, %c0_i32_0 : i32, i32
  }
  func.func @transform_2(%arg0: i32) -> (i32, i32) {
    %c0_i32 = arith.constant 0 : i32
    %c0_i32_0 = arith.constant 0 : i32
    %c0_i32_1 = arith.constant 0 : i32
    return %c0_i32, %c0_i32_0 : i32, i32
  }
  func.func @transform_3(%arg0: i32) -> (i32, i32) {
    %c0_i32 = arith.constant 0 : i32
    %c0_i32_0 = arith.constant 0 : i32
    %c0_i32_1 = arith.constant 0 : i32
    return %c0_i32, %c0_i32_0 : i32, i32
  }
  func.func @transform_4(%arg0: i32) -> (i32, i32) {
    %c0_i32 = arith.constant 0 : i32
    %c0_i32_0 = arith.constant 0 : i32
    %c0_i32_1 = arith.constant 0 : i32
    return %c0_i32, %c0_i32_0 : i32, i32
  }
  func.func @transform_5(%arg0: i32) -> (i32, i32) {
    %c0_i32 = arith.constant 0 : i32
    %c0_i32_0 = arith.constant 0 : i32
    %c0_i32_1 = arith.constant 0 : i32
    return %c0_i32, %c0_i32_0 : i32, i32
  }
  func.func @transform_6(%arg0: i32) -> (i32, i32) {
    %c0_i32 = arith.constant 0 : i32
    %c0_i32_0 = arith.constant 0 : i32
    %c0_i32_1 = arith.constant 0 : i32
    return %c0_i32, %c0_i32_0 : i32, i32
  }
  func.func @transform_7(%arg0: i32) -> (i32, i32) {
    %c0_i32 = arith.constant 0 : i32
    %c0_i32_0 = arith.constant 0 : i32
    %c0_i32_1 = arith.constant 0 : i32
    return %c0_i32, %c0_i32_0 : i32, i32
  }
  func.func @transform_8(%arg0: i32) -> (i32, i32) {
    %c0_i32 = arith.constant 0 : i32
    %c0_i32_0 = arith.constant 0 : i32
    %c0_i32_1 = arith.constant 0 : i32
    return %c0_i32, %c0_i32_0 : i32, i32
  }
  func.func @transform_9(%arg0: i32) -> (i32, i32) {
    %c0_i32 = arith.constant 0 : i32
    %c0_i32_0 = arith.constant 0 : i32
    %c0_i32_1 = arith.constant 0 : i32
    return %c0_i32, %c0_i32_0 : i32, i32
  }
  func.func @transform_10(%arg0: i32) -> (i32, i32) {
    %c0_i32 = arith.constant 0 : i32
    %c0_i32_0 = arith.constant 0 : i32
    %c0_i32_1 = arith.constant 0 : i32
    return %c0_i32, %c0_i32_0 : i32, i32
  }
  func.func @transform_11(%arg0: i32) -> (i32, i32) {
    %c0_i32 = arith.constant 0 : i32
    %c0_i32_0 = arith.constant 0 : i32
    return %arg0, %c0_i32 : i32, i32
  }
}

</mosaic_0001>

<bundles_post_ra>
// kernel: supsegs_encoder_pallas.1
= control target key start
LH: loop header
LB: loop body
LE: loop exit
PB: predicated region body
PF: predicated region fallthrough
CT: control target
= control target key end

     0   :  { %s2047_s17 = smov 0   ;;  %s2333_s0 = inlined_call_operand.vmem [shape: f32[256,8], index: 0, kind: input, shape index: {}]   ;;  %s2334_s1 = inlined_call_operand.vmem [shape: f32[8,128], index: 1, kind: input, shape index: {}]   ;;  %s2335_s2 = inlined_call_operand.vmem [shape: f32[1,128], index: 2, kind: input, shape index: {}]   ;;  %s2336_s3 = inlined_call_operand.vmem [shape: f32[128,128], index: 3, kind: input, shape index: {}]   ;;  %s2337_s4 = inlined_call_operand.vmem [shape: f32[1,128], index: 4, kind: input, shape index: {}]   ;;  %s2338_s5 = inlined_call_operand.vmem [shape: f32[128,128], index: 5, kind: input, shape index: {}]   ;;  %s2339_s6 = inlined_call_operand.vmem [shape: f32[1,128], index: 6, kind: input, shape index: {}]   ;;  %s2340_s7 = inlined_call_operand.vmem [shape: f32[128,128], index: 7, kind: input, shape index: {}]   ;;  %s2341_s8 = inlined_call_operand.vmem [shape: f32[1,128], index: 8, kind: input, shape index: {}]   ;;  %s2342_s9 = inlined_call_operand.vmem [shape: f32[128,128], index: 9, kind: input, shape index: {}]   ;;  %s2343_s10 = inlined_call_operand.vmem [shape: f32[1,128], index: 10, kind: input, shape index: {}]   ;;  %s2344_s11 = inlined_call_operand.vmem [shape: f32[256,128], index: 11, kind: output, shape index: {}]  }
   0x1 LB: > { %s1416_s18 = sadd.s32 4294967295, %s1985_s17   ;;  %p1420_p0 = scmp.ge.s32.totalorder %s1985_s17, 1  ;;  %s1985_s17 = sphi %s2047_s17, %s21_s17  }
   0x2   : > { %p338_p1 = scmp.lt.s32.totalorder %s1985_s17, 3 }
   0x4   : > { %p339_p2 = pnand %p1420_p0, %p338_p1 }
   0x5   : > { %v406_v0 = vld [vmem:[%s2334_s1] sm:$0xff] (!%p339_p2)  ;;  %s1421_s21 = sshll.u32 (!%p339_p2), %s1416_s18, 4  ;;  %v625_v2 = vld [vmem:[%s2336_s3 + $0x8] sm:$0xff] (!%p339_p2)  ;;  %v626_v4 = vld [vmem:[%s2336_s3 + $0x10] sm:$0xff] (!%p339_p2)  ;;  %vm414_vm0 = vcmask (!%p339_p2), 64512  }
   0x6   : > { %342 = sbr.rel (%p339_p2) target bundleno = 1134 (0x46e), region = 64  ;;  %v624_v1 = vld [vmem:[%s2336_s3] sm:$0xff] (!%p339_p2)  ;;  %1593 = vmatprep.subr.mxu0 (!%p339_p2), %v406_v0  ;;  %p379_p3 = scmp.lt.s32.totalorder (!%p339_p2), %s1421_s21, 31  ;;  %v627_v5 = vld [vmem:[%s2336_s3 + $0x18] sm:$0xff] (!%p339_p2)  ;;  %v629_v8 = vld [vmem:[%s2336_s3 + $0x28] sm:$0xff] (!%p339_p2) }
   0x7   : > { %v1843_v3 = vpack.c.bf16 (!%p339_p2), %v625_v2, %v624_v1  ;;  %1594 = vmatpush3.msra.mxu0 (!%p339_p2), %v406_v0  ;;  %v1847_v6 = vpack.c.bf16 (!%p339_p2), %v627_v5, %v626_v4  ;;  %v628_v7 = vld [vmem:[%s2336_s3 + $0x20] sm:$0xff] (!%p339_p2)  ;;  %v630_v10 = vld [vmem:[%s2336_s3 + $0x30] sm:$0xff] (!%p339_p2)  ;;  %v631_v11 = vld [vmem:[%s2336_s3 + $0x38] sm:$0xff] (!%p339_p2) }
   0x8   : > { %v1851_v9 = vpack.c.bf16 (!%p339_p2), %v629_v8, %v628_v7  ;;  %v1855_v15 = vpack.c.bf16 (!%p339_p2), %v631_v11, %v630_v10  ;;  %v632_v17 = vld [vmem:[%s2336_s3 + $0x40] sm:$0xff] (!%p339_p2)  ;;  %v633_v18 = vld [vmem:[%s2336_s3 + $0x48] sm:$0xff] (!%p339_p2)  ;;  %v634_v22 = vld [vmem:[%s2336_s3 + $0x50] sm:$0xff] (!%p339_p2) }
   0x9   : > { %1844 = vmatprep.subr.bf16.mxu1 (!%p339_p2), %v1843_v3  ;;  %v1859_v20 = vpack.c.bf16 (!%p339_p2), %v633_v18, %v632_v17  ;;  %v635_v23 = vld [vmem:[%s2336_s3 + $0x58] sm:$0xff] (!%p339_p2)  ;;  %v636_v27 = vld [vmem:[%s2336_s3 + $0x60] sm:$0xff] (!%p339_p2)  ;;  %v637_v28 = vld [vmem:[%s2336_s3 + $0x68] sm:$0xff] (!%p339_p2) }
   0xa   : > { %1846 = vmatpush3.bf16.msra.mxu1 (!%p339_p2), %v1843_v3  ;;  %v1863_v25 = vpack.c.bf16 (!%p339_p2), %v635_v23, %v634_v22  ;;  %v1867_v30 = vpack.c.bf16 (!%p339_p2), %v637_v28, %v636_v27  ;;  %v638_v38 = vld [vmem:[%s2336_s3 + $0x70] sm:$0xff] (!%p339_p2)  ;;  %v639_v39 = vld [vmem:[%s2336_s3 + $0x78] sm:$0xff] (!%p339_p2)  ;;  %v808_v41 = vld [vmem:[%s2338_s5] sm:$0xff] (!%p339_p2) }
   0xb   : > { %1848 = vmatprep.subr.bf16.mxu1 (!%p339_p2), %v1847_v6  ;;  %v1871_v40 = vpack.c.bf16 (!%p339_p2), %v639_v39, %v638_v38  ;;  %v809_v42 = vld [vmem:[%s2338_s5 + $0x8] sm:$0xff] (!%p339_p2)  ;;  %v810_v43 = vld [vmem:[%s2338_s5 + $0x10] sm:$0xff] (!%p339_p2)  ;;  %v811_v45 = vld [vmem:[%s2338_s5 + $0x18] sm:$0xff] (!%p339_p2) }
   0xc   : > { %v1875_v44 = vpack.c.bf16 (!%p339_p2), %v809_v42, %v808_v41  ;;  %v1879_v46 = vpack.c.bf16 (!%p339_p2), %v811_v45, %v810_v43  ;;  %v812_v47 = vld [vmem:[%s2338_s5 + $0x20] sm:$0xff] (!%p339_p2)  ;;  %v813_v48 = vld [vmem:[%s2338_s5 + $0x28] sm:$0xff] (!%p339_p2)  ;;  %v814_v50 = vld [vmem:[%s2338_s5 + $0x30] sm:$0xff] (!%p339_p2) }
   0xd   : > { %s2346_s21 = smov (!%p379_p3, %s1421_s21), 31  ;;  %v1883_v49 = vpack.c.bf16 %v813_v48, %v812_v47  ;;  %v815_v51 = vld [vmem:[%s2338_s5 + $0x38] sm:$0xff]  ;;  %v816_v53 = vld [vmem:[%s2338_s5 + $0x40] sm:$0xff]  ;;  %v817_v54 = vld [vmem:[%s2338_s5 + $0x48] sm:$0xff] }
   0xe   : > { %s1422_s15 = sshll.u32 %s2346_s21, 3  ;;  %1850 = vmatpush3.bf16.msra.mxu1 %v1847_v6  ;;  %1876 = vmatprep.subr.bf16.mxu0 %v1875_v44  ;;  %v1887_v52 = vpack.c.bf16 %v815_v51, %v814_v50  ;;  %v1891_v55 = vpack.c.bf16 %v817_v54, %v816_v53  ;;  %v818_v56 = vld [vmem:[%s2338_s5 + $0x50] sm:$0xff]  ;;  %v819_v57 = vld [vmem:[%s2338_s5 + $0x58] sm:$0xff]  ;;  %v820_v59 = vld [vmem:[%s2338_s5 + $0x60] sm:$0xff] }
   0xf   : > { %s2084_s19 = scalar_lea.vmem %s2333_s0, %s1422_s15  ;;  %1852 = vmatprep.subr.bf16.mxu1 %v1851_v9  ;;  %v1895_v58 = vpack.c.bf16 %v819_v57, %v818_v56  ;;  %v821_v60 = vld [vmem:[%s2338_s5 + $0x68] sm:$0xff]  ;;  %v1425_v62 = vld [vmem:[%s2335_s2] ss:$0 sm:$0xff]  ;;  %v822_v47 = vld [vmem:[%s2338_s5 + $0x70] sm:$0xff]  ;;  %s2312_s22 = scalar_lea.vmem %s2344_s11, %s1422_s15 }
  0x10   : > { %v390_v12 = vld [vmem:[%s2084_s19] sm:$0xff]  ;;  %v391_v13 = vld [vmem:[%s2084_s19 + $0x8] sm:$0xff]  ;;  %v392_v14 = vld [vmem:[%s2084_s19 + $0x10] sm:$0xff]  ;;  %v1899_v61 = vpack.c.bf16 %v821_v60, %v820_v59 }
  0x11   : > { %1595 = vmatprep.mubr.msk.f32.mxu0 %vm414_vm0, %v390_v12  ;;  %v393_v16 = vld [vmem:[%s2084_s19 + $0x18] sm:$0xff]  ;;  %v394_v19 = vld [vmem:[%s2084_s19 + $0x20] sm:$0xff]  ;;  %v395_v21 = vld [vmem:[%s2084_s19 + $0x28] sm:$0xff] }
  0x12   : > { %1596 = vmatmul.mubr.msk.f32.vlgmr.msra.gmra.mrb[0].mxu0 %vm414_vm0, %v391_v13  ;;  %1854 = vmatpush3.bf16.msra.mxu1 %v1851_v9  ;;  %v396_v24 = vld [vmem:[%s2084_s19 + $0x30] sm:$0xff]  ;;  %v397_v26 = vld [vmem:[%s2084_s19 + $0x38] sm:$0xff]  ;;  %v398_v29 = vld [vmem:[%s2084_s19 + $0x40] sm:$0xff] }
  0x13   : > { %1598 = vmatprep.mubr.msk.f32.mxu0 %vm414_vm0, %v392_v14  ;;  %1856 = vmatprep.subr.bf16.mxu1 %v1855_v15  ;;  %v399_v31 = vld [vmem:[%s2084_s19 + $0x48] sm:$0xff]  ;;  %v400_v32 = vld [vmem:[%s2084_s19 + $0x50] sm:$0xff]  ;;  %v401_v33 = vld [vmem:[%s2084_s19 + $0x58] sm:$0xff] }
  0x14   : > { %v402_v34 = vld [vmem:[%s2084_s19 + $0x60] sm:$0xff]  ;;  %v403_v35 = vld [vmem:[%s2084_s19 + $0x68] sm:$0xff]  ;;  %v404_v36 = vld [vmem:[%s2084_s19 + $0x70] sm:$0xff]  ;;  %1878 = vmatpush3.bf16.msra.mxu0 %v1875_v44 }
  0x15   : > { %v405_v37 = vld [vmem:[%s2084_s19 + $0x78] sm:$0xff]  ;;  %1880 = vmatprep.subr.bf16.mxu0 %v1879_v46  ;;  %v992_v50 = vld [vmem:[%s2340_s7] sm:$0xff]  ;;  %v993_v51 = vld [vmem:[%s2340_s7 + $0x8] sm:$0xff] }
  0x16   : > { %1599 = vmatmul.mubr.msk.f32.gmra.mrb[2].mxu0 %vm414_vm0, %v393_v16  ;;  %1858 = vmatpush3.bf16.msra.mxu1 %v1855_v15  ;;  %v823_v48 = vld [vmem:[%s2338_s5 + $0x78] sm:$0xff]  ;;  %v1907_v53 = vpack.c.bf16 %v993_v51, %v992_v50  ;;  %v996_v56 = vld [vmem:[%s2340_s7 + $0x20] sm:$0xff]  ;;  %v997_v57 = vld [vmem:[%s2340_s7 + $0x28] sm:$0xff] }
  0x17   : > { %1601 = vmatprep.mubr.msk.f32.mxu0 %vm414_vm0, %v394_v19  ;;  %1860 = vmatprep.subr.bf16.mxu1 %v1859_v20  ;;  %v995_v54 = vld [vmem:[%s2340_s7 + $0x18] sm:$0xff]  ;;  %v998_v59 = vld [vmem:[%s2340_s7 + $0x30] sm:$0xff] }
  0x18   : > { %1882 = vmatpush3.bf16.msra.mxu0 %v1879_v46  ;;  %v999_v60 = vld [vmem:[%s2340_s7 + $0x38] sm:$0xff] }
  0x19   : > { %1884 = vmatprep.subr.bf16.mxu0 %v1883_v49 }
  0x1a   : > { %1602 = vmatmul.mubr.msk.f32.gmra.mrb[4].mxu0 %vm414_vm0, %v395_v21  ;;  %1862 = vmatpush3.bf16.msra.mxu1 %v1859_v20 }
  0x1b   : > { %1604 = vmatprep.mubr.msk.f32.mxu0 %vm414_vm0, %v396_v24  ;;  %1864 = vmatprep.subr.bf16.mxu1 %v1863_v25 }
  0x1c   : > { %1886 = vmatpush3.bf16.msra.mxu0 %v1883_v49  ;;  %v1903_v49 = vpack.c.bf16 %v823_v48, %v822_v47 }
  0x1d   : > { %1888 = vmatprep.subr.bf16.mxu0 %v1887_v52 }
  0x1e   : > { %1605 = vmatmul.mubr.msk.f32.gmra.mrb[6].mxu0 %vm414_vm0, %v397_v26  ;;  %1866 = vmatpush3.bf16.msra.mxu1 %v1863_v25 }
  0x1f   : > { %1607 = vmatprep.mubr.msk.f32.mxu0 %vm414_vm0, %v398_v29  ;;  %1868 = vmatprep.subr.bf16.mxu1 %v1867_v30 }
  0x20   : > { %1890 = vmatpush3.bf16.msra.mxu0 %v1887_v52  ;;  %v994_v52 = vld [vmem:[%s2340_s7 + $0x10] sm:$0xff] }
  0x21   : > { %1892 = vmatprep.subr.bf16.mxu0 %v1891_v55 }
  0x22   : > { %1608 = vmatmul.mubr.msk.f32.gmra.mrb[8].mxu0 %vm414_vm0, %v399_v31  ;;  %1870 = vmatpush3.bf16.msra.mxu1 %v1867_v30 }
  0x23   : > { %1610 = vmatprep.mubr.msk.f32.mxu0 %vm414_vm0, %v400_v32  ;;  %1872 = vmatprep.subr.bf16.mxu1 %v1871_v40 }
  0x24   : > { %1894 = vmatpush3.bf16.msra.mxu0 %v1891_v55  ;;  %v1911_v55 = vpack.c.bf16 %v995_v54, %v994_v52 }
  0x25   : > { %1896 = vmatprep.subr.bf16.mxu0 %v1895_v58 }
  0x26   : > { %1611 = vmatmul.mubr.msk.f32.gmra.mrb[10].mxu0 %vm414_vm0, %v401_v33  ;;  %1874 = vmatpush3.bf16.msra.mxu1 %v1871_v40 }
  0x27   : > { %1613 = vmatprep.mubr.msk.f32.mxu0 %vm414_vm0, %v402_v34  ;;  %1908 = vmatprep.subr.bf16.mxu1 %v1907_v53 }
  0x28   : > { %1898 = vmatpush3.bf16.msra.mxu0 %v1895_v58  ;;  %v1915_v58 = vpack.c.bf16 %v997_v57, %v996_v56  ;;  %v1006_v56 = vld [vmem:[%s2340_s7 + $0x70] sm:$0xff]  ;;  %v1007_v57 = vld [vmem:[%s2340_s7 + $0x78] sm:$0xff] }
  0x29   : > { %1900 = vmatprep.subr.bf16.mxu0 %v1899_v61 }
  0x2a   : > { %1614 = vmatmul.mubr.msk.f32.gmra.mrb[12].mxu0 %vm414_vm0, %v403_v35 }
  0x2b   : > { %1616 = vmatprep.mubr.msk.f32.mxu0 %vm414_vm0, %v404_v36 }
  0x2c   : > { %1902 = vmatpush3.bf16.msra.mxu0 %v1899_v61  ;;  %v1919_v61 = vpack.c.bf16 %v999_v60, %v998_v59  ;;  %v1176_v59 = vld [vmem:[%s2342_s9] sm:$0xff]  ;;  %v1177_v60 = vld [vmem:[%s2342_s9 + $0x8] sm:$0xff] }
  0x2d   : > { %1904 = vmatprep.subr.bf16.mxu0 %v1903_v49 }
  0x2e   : > { %1617 = vmatmul.mubr.msk.f32.gmra.mrb[14].mxu0 %vm414_vm0, %v405_v37 }
  0x30   : > { %1906 = vmatpush3.bf16.msra.mxu0 %v1903_v49 }
  0xe5   : > { %v1597_v63 = vpop.f32.mrb[0].mxu0 }
  0xe6   : > { %v535_v0 = vadd.f32 %v1597_v63, %v1425_v62  ;;  %v529_v1 = vpop.f32.mrb[1].mxu0  ;;  %v1001_v63 = vld [vmem:[%s2340_s7 + $0x48] sm:$0xff] }
  0xe7   : > { %v530_v2 = vadd.f32 %v1425_v62, %v529_v1  ;;  %v1002_v1 = vld [vmem:[%s2340_s7 + $0x50] sm:$0xff] }
  0xe8   : > { %v609_v5 = vmax.f32 %v535_v0, 0.0 }
  0xe9   : > { %v1600_v3 = vpop.f32.mrb[2].mxu0  ;;  %v608_v4 = vmax.f32 %v530_v2, 0.0  ;;  %v1003_v2 = vld [vmem:[%s2340_s7 + $0x58] sm:$0xff] }
  0xea   : > { %v545_v6 = vadd.f32 %v1600_v3, %v1425_v62  ;;  %v539_v7 = vpop.f32.mrb[3].mxu0  ;;  %v1927_v3 = vpack.c.bf16 %v1003_v2, %v1002_v1  ;;  %v1180_v1 = vld [vmem:[%s2342_s9 + $0x20] sm:$0xff]  ;;  %v1181_v2 = vld [vmem:[%s2342_s9 + $0x28] sm:$0xff] }
  0xeb   : > { %v540_v8 = vadd.f32 %v1425_v62, %v539_v7  ;;  %1651 = vmatprep.mubr.f32.mxu1 %v608_v4  ;;  %v1004_v4 = vld [vmem:[%s2340_s7 + $0x60] sm:$0xff] }
  0xec   : > { %1652 = vmatmul.mubr.f32.vlgmr.msra.gmra.mrb[0].mxu1 %v609_v5  ;;  %v611_v11 = vmax.f32 %v545_v6, 0.0  ;;  %v1005_v5 = vld [vmem:[%s2340_s7 + $0x68] sm:$0xff]  ;;  %v1442_v7 = vld [vmem:[%s2337_s4] ss:$0 sm:$0xff] }
  0xed   : > { %v610_v9 = vmax.f32 %v540_v8, 0.0  ;;  %v1603_v10 = vpop.f32.mrb[4].mxu0  ;;  %1910 = vmatpush3.bf16.msra.mxu1 %v1907_v53  ;;  %v1931_v6 = vpack.c.bf16 %v1005_v5, %v1004_v4  ;;  %v1182_v4 = vld [vmem:[%s2342_s9 + $0x30] sm:$0xff]  ;;  %v1183_v5 = vld [vmem:[%s2342_s9 + $0x38] sm:$0xff] }
  0xee   : > { %v555_v12 = vadd.f32 %v1603_v10, %v1425_v62  ;;  %v549_v13 = vpop.f32.mrb[5].mxu0  ;;  %1912 = vmatprep.subr.bf16.mxu1 %v1911_v55 }
  0xef   : > { %v550_v14 = vadd.f32 %v1425_v62, %v549_v13  ;;  %1654 = vmatprep.mubr.f32.mxu1 %v610_v9 }
  0xf0   : > { %1655 = vmatmul.mubr.f32.gmra.mrb[2].mxu1 %v611_v11  ;;  %v613_v17 = vmax.f32 %v555_v12, 0.0 }
  0xf1   : > { %v612_v15 = vmax.f32 %v550_v14, 0.0  ;;  %v1606_v16 = vpop.f32.mrb[6].mxu0  ;;  %1914 = vmatpush3.bf16.msra.mxu1 %v1911_v55 }
  0xf2   : > { %v565_v18 = vadd.f32 %v1606_v16, %v1425_v62  ;;  %v559_v19 = vpop.f32.mrb[7].mxu0  ;;  %1916 = vmatprep.subr.bf16.mxu1 %v1915_v58 }
  0xf3   : > { %v560_v20 = vadd.f32 %v1425_v62, %v559_v19  ;;  %1657 = vmatprep.mubr.f32.mxu1 %v612_v15 }
  0xf4   : > { %1658 = vmatmul.mubr.f32.gmra.mrb[4].mxu1 %v613_v17  ;;  %v615_v23 = vmax.f32 %v565_v18, 0.0 }
  0xf5   : > { %v614_v21 = vmax.f32 %v560_v20, 0.0  ;;  %v1609_v22 = vpop.f32.mrb[8].mxu0  ;;  %1918 = vmatpush3.bf16.msra.mxu1 %v1915_v58  ;;  %v1935_v58 = vpack.c.bf16 %v1007_v57, %v1006_v56 }
  0xf6   : > { %v575_v24 = vadd.f32 %v1609_v22, %v1425_v62  ;;  %v569_v25 = vpop.f32.mrb[9].mxu0  ;;  %1920 = vmatprep.subr.bf16.mxu1 %v1919_v61 }
  0xf7   : > { %v570_v26 = vadd.f32 %v1425_v62, %v569_v25  ;;  %1660 = vmatprep.mubr.f32.mxu1 %v614_v21 }
  0xf8   : > { %1661 = vmatmul.mubr.f32.gmra.mrb[6].mxu1 %v615_v23  ;;  %v617_v29 = vmax.f32 %v575_v24, 0.0 }
  0xf9   : > { %v616_v27 = vmax.f32 %v570_v26, 0.0  ;;  %v1612_v28 = vpop.f32.mrb[10].mxu0  ;;  %1922 = vmatpush3.bf16.msra.mxu1 %v1919_v61  ;;  %v1178_v61 = vld [vmem:[%s2342_s9 + $0x10] sm:$0xff] }
  0xfa   : > { %v585_v30 = vadd.f32 %v1612_v28, %v1425_v62  ;;  %v579_v31 = vpop.f32.mrb[11].mxu0 }
  0xfb   : > { %v580_v32 = vadd.f32 %v1425_v62, %v579_v31  ;;  %1663 = vmatprep.mubr.f32.mxu1 %v616_v27 }
  0xfc   : > { %1664 = vmatmul.mubr.f32.gmra.mrb[8].mxu1 %v617_v29  ;;  %v619_v35 = vmax.f32 %v585_v30, 0.0 }
  0xfd   : > { %v618_v33 = vmax.f32 %v580_v32, 0.0  ;;  %v1615_v34 = vpop.f32.mrb[12].mxu0 }
  0xfe   : > { %v595_v36 = vadd.f32 %v1615_v34, %v1425_v62  ;;  %v589_v37 = vpop.f32.mrb[13].mxu0 }
  0xff   : > { %v590_v38 = vadd.f32 %v1425_v62, %v589_v37  ;;  %1666 = vmatprep.mubr.f32.mxu1 %v618_v33 }
 0x100   : > { %1667 = vmatmul.mubr.f32.gmra.mrb[10].mxu1 %v619_v35  ;;  %v621_v41 = vmax.f32 %v595_v36, 0.0 }
 0x101   : > { %v620_v39 = vmax.f32 %v590_v38, 0.0  ;;  %v1618_v40 = vpop.f32.mrb[14].mxu0 }
 0x102   : > { %v605_v42 = vadd.f32 %v1618_v40, %v1425_v62  ;;  %v599_v43 = vpop.f32.mrb[15].mxu0 }
 0x103   : > { %v600_v44 = vadd.f32 %v1425_v62, %v599_v43  ;;  %1669 = vmatprep.mubr.f32.mxu1 %v620_v39  ;;  %v1000_v62 = vld [vmem:[%s2340_s7 + $0x40] sm:$0xff] }
 0x104   : > { %1670 = vmatmul.mubr.f32.gmra.mrb[12].mxu1 %v621_v41  ;;  %v623_v46 = vmax.f32 %v605_v42, 0.0  ;;  %v1923_v0 = vpack.c.bf16 %v1001_v63, %v1000_v62  ;;  %v1939_v62 = vpack.c.bf16 %v1177_v60, %v1176_v59  ;;  %v1179_v63 = vld [vmem:[%s2342_s9 + $0x18] sm:$0xff] }
 0x105   : > { %v622_v45 = vmax.f32 %v600_v44, 0.0 }
 0x106   : > { %1924 = vmatprep.subr.bf16.mxu1 %v1923_v0  ;;  %1940 = vmatprep.subr.bf16.mxu0 %v1939_v62 }
 0x107   : > { %1672 = vmatprep.mubr.f32.mxu1 %v622_v45  ;;  %1926 = vmatpush3.bf16.msra.mxu1 %v1923_v0  ;;  %v1943_v0 = vpack.c.bf16 %v1179_v63, %v1178_v61 }
 0x108   : > { %1673 = vmatmul.mubr.f32.gmra.mrb[14].mxu1 %v623_v46  ;;  %1928 = vmatprep.subr.bf16.mxu1 %v1927_v3 }
 0x10b   : > { %1930 = vmatpush3.bf16.msra.mxu1 %v1927_v3  ;;  %v1947_v3 = vpack.c.bf16 %v1181_v2, %v1180_v1  ;;  %v1190_v1 = vld [vmem:[%s2342_s9 + $0x70] sm:$0xff]  ;;  %v1191_v2 = vld [vmem:[%s2342_s9 + $0x78] sm:$0xff] }
 0x10c   : > { %1932 = vmatprep.subr.bf16.mxu1 %v1931_v6 }
 0x10f   : > { %1934 = vmatpush3.bf16.msra.mxu1 %v1931_v6  ;;  %v1951_v6 = vpack.c.bf16 %v1183_v5, %v1182_v4  ;;  %v1444_v4 = vld [vmem:[%s2341_s8] ss:$0 sm:$0xff] }
 0x110   : > { %1936 = vmatprep.subr.bf16.mxu1 %v1935_v58 }
 0x113   : > { %1938 = vmatpush3.bf16.msra.mxu1 %v1935_v58 }
 0x1bf   : > { %v1653_v8 = vpop.f32.mrb[0].mxu1 }
 0x1c0   : > { %v719_v9 = vadd.f32 %v1653_v8, %v1442_v7  ;;  %v713_v10 = vpop.f32.mrb[1].mxu1  ;;  %v1185_v8 = vld [vmem:[%s2342_s9 + $0x48] sm:$0xff] }
 0x1c1   : > { %v714_v11 = vadd.f32 %v1442_v7, %v713_v10  ;;  %v1186_v10 = vld [vmem:[%s2342_s9 + $0x50] sm:$0xff] }
 0x1c2   : > { %v793_v14 = vmax.f32 %v719_v9, 0.0 }
 0x1c3   : > { %v792_v12 = vmax.f32 %v714_v11, 0.0  ;;  %v1656_v13 = vpop.f32.mrb[2].mxu1  ;;  %v1187_v11 = vld [vmem:[%s2342_s9 + $0x58] sm:$0xff] }
 0x1c4   : > { %v729_v15 = vadd.f32 %v1656_v13, %v1442_v7  ;;  %v723_v16 = vpop.f32.mrb[3].mxu1  ;;  %v1188_v13 = vld [vmem:[%s2342_s9 + $0x60] sm:$0xff] }
 0x1c5   : > { %v724_v17 = vadd.f32 %v1442_v7, %v723_v16  ;;  %1707 = vmatprep.mubr.f32.mxu0 %v792_v12  ;;  %v1959_v12 = vpack.c.bf16 %v1187_v11, %v1186_v10  ;;  %v1443_v16 = vld [vmem:[%s2339_s6] ss:$0 sm:$0xff] }
 0x1c6   : > { %1708 = vmatmul.mubr.f32.vlgmr.msra.gmra.mrb[16].mxu0 %v793_v14  ;;  %v795_v20 = vmax.f32 %v729_v15, 0.0  ;;  %v1189_v14 = vld [vmem:[%s2342_s9 + $0x68] sm:$0xff] }
 0x1c7   : > { %v794_v18 = vmax.f32 %v724_v17, 0.0  ;;  %v1659_v19 = vpop.f32.mrb[4].mxu1  ;;  %1942 = vmatpush3.bf16.msra.mxu0 %v1939_v62  ;;  %v1963_v15 = vpack.c.bf16 %v1189_v14, %v1188_v13 }
 0x1c8   : > { %v739_v21 = vadd.f32 %v1659_v19, %v1442_v7  ;;  %v733_v22 = vpop.f32.mrb[5].mxu1  ;;  %1944 = vmatprep.subr.bf16.mxu0 %v1943_v0 }
 0x1c9   : > { %v734_v23 = vadd.f32 %v1442_v7, %v733_v22  ;;  %1710 = vmatprep.mubr.f32.mxu0 %v794_v18 }
 0x1ca   : > { %1711 = vmatmul.mubr.f32.gmra.mrb[18].mxu0 %v795_v20  ;;  %v797_v26 = vmax.f32 %v739_v21, 0.0 }
 0x1cb   : > { %v796_v24 = vmax.f32 %v734_v23, 0.0  ;;  %v1662_v25 = vpop.f32.mrb[6].mxu1  ;;  %1946 = vmatpush3.bf16.msra.mxu0 %v1943_v0 }
 0x1cc   : > { %v749_v27 = vadd.f32 %v1662_v25, %v1442_v7  ;;  %v743_v28 = vpop.f32.mrb[7].mxu1  ;;  %1948 = vmatprep.subr.bf16.mxu0 %v1947_v3 }
 0x1cd   : > { %v744_v29 = vadd.f32 %v1442_v7, %v743_v28  ;;  %1713 = vmatprep.mubr.f32.mxu0 %v796_v24 }
 0x1ce   : > { %1714 = vmatmul.mubr.f32.gmra.mrb[20].mxu0 %v797_v26  ;;  %v799_v32 = vmax.f32 %v749_v27, 0.0 }
 0x1cf   : > { %v798_v30 = vmax.f32 %v744_v29, 0.0  ;;  %v1665_v31 = vpop.f32.mrb[8].mxu1  ;;  %1950 = vmatpush3.bf16.msra.mxu0 %v1947_v3  ;;  %v1967_v3 = vpack.c.bf16 %v1191_v2, %v1190_v1 }
 0x1d0   : > { %v759_v33 = vadd.f32 %v1665_v31, %v1442_v7  ;;  %v753_v34 = vpop.f32.mrb[9].mxu1  ;;  %1952 = vmatprep.subr.bf16.mxu0 %v1951_v6 }
 0x1d1   : > { %v754_v35 = vadd.f32 %v1442_v7, %v753_v34  ;;  %1716 = vmatprep.mubr.f32.mxu0 %v798_v30 }
 0x1d2   : > { %1717 = vmatmul.mubr.f32.gmra.mrb[22].mxu0 %v799_v32  ;;  %v801_v38 = vmax.f32 %v759_v33, 0.0 }
 0x1d3   : > { %v800_v36 = vmax.f32 %v754_v35, 0.0  ;;  %v1668_v37 = vpop.f32.mrb[10].mxu1  ;;  %1954 = vmatpush3.bf16.msra.mxu0 %v1951_v6 }
 0x1d4   : > { %v769_v39 = vadd.f32 %v1668_v37, %v1442_v7  ;;  %v763_v40 = vpop.f32.mrb[11].mxu1 }
 0x1d5   : > { %v764_v41 = vadd.f32 %v1442_v7, %v763_v40  ;;  %1719 = vmatprep.mubr.f32.mxu0 %v800_v36 }
 0x1d6   : > { %1720 = vmatmul.mubr.f32.gmra.mrb[24].mxu0 %v801_v38  ;;  %v803_v44 = vmax.f32 %v769_v39, 0.0 }
 0x1d7   : > { %v802_v42 = vmax.f32 %v764_v41, 0.0  ;;  %v1671_v43 = vpop.f32.mrb[12].mxu1 }
 0x1d8   : > { %v779_v45 = vadd.f32 %v1671_v43, %v1442_v7  ;;  %v773_v46 = vpop.f32.mrb[13].mxu1 }
 0x1d9   : > { %v774_v47 = vadd.f32 %v1442_v7, %v773_v46  ;;  %1722 = vmatprep.mubr.f32.mxu0 %v802_v42 }
 0x1da   : > { %1723 = vmatmul.mubr.f32.gmra.mrb[26].mxu0 %v803_v44  ;;  %v805_v50 = vmax.f32 %v779_v45, 0.0 }
 0x1db   : > { %v804_v48 = vmax.f32 %v774_v47, 0.0  ;;  %v1674_v49 = vpop.f32.mrb[14].mxu1 }
 0x1dc   : > { %v789_v51 = vadd.f32 %v1674_v49, %v1442_v7  ;;  %v783_v52 = vpop.f32.mrb[15].mxu1 }
 0x1dd   : > { %v784_v53 = vadd.f32 %v1442_v7, %v783_v52  ;;  %1725 = vmatprep.mubr.f32.mxu0 %v804_v48  ;;  %v1184_v7 = vld [vmem:[%s2342_s9 + $0x40] sm:$0xff] }
 0x1de   : > { %1726 = vmatmul.mubr.f32.gmra.mrb[28].mxu0 %v805_v50  ;;  %v807_v55 = vmax.f32 %v789_v51, 0.0  ;;  %v1955_v9 = vpack.c.bf16 %v1185_v8, %v1184_v7 }
 0x1df   : > { %v806_v54 = vmax.f32 %v784_v53, 0.0 }
 0x1e0   : > { %1956 = vmatprep.subr.bf16.mxu0 %v1955_v9 }
 0x1e1   : > { %1728 = vmatprep.mubr.f32.mxu0 %v806_v54  ;;  %1958 = vmatpush3.bf16.msra.mxu0 %v1955_v9 }
 0x1e2   : > { %1729 = vmatmul.mubr.f32.gmra.mrb[30].mxu0 %v807_v55  ;;  %1960 = vmatprep.subr.bf16.mxu0 %v1959_v12 }
 0x1e5   : > { %1962 = vmatpush3.bf16.msra.mxu0 %v1959_v12 }
 0x1e6   : > { %1964 = vmatprep.subr.bf16.mxu0 %v1963_v15 }
 0x1e9   : > { %1966 = vmatpush3.bf16.msra.mxu0 %v1963_v15 }
 0x1ea   : > { %1968 = vmatprep.subr.bf16.mxu0 %v1967_v3 }
 0x1ed   : > { %1970 = vmatpush3.bf16.msra.mxu0 %v1967_v3 }
 0x299   : > { %v1709_v17 = vpop.f32.mrb[16].mxu0 }
 0x29a   : > { %v903_v18 = vadd.f32 %v1709_v17, %v1443_v16  ;;  %v897_v19 = vpop.f32.mrb[17].mxu0 }
 0x29b   : > { %v898_v20 = vadd.f32 %v1443_v16, %v897_v19 }
 0x29c   : > { %v977_v23 = vmax.f32 %v903_v18, 0.0 }
 0x29d   : > { %v976_v21 = vmax.f32 %v898_v20, 0.0  ;;  %v1712_v22 = vpop.f32.mrb[18].mxu0 }
 0x29e   : > { %v913_v24 = vadd.f32 %v1712_v22, %v1443_v16  ;;  %v907_v25 = vpop.f32.mrb[19].mxu0 }
 0x29f   : > { %v908_v26 = vadd.f32 %v1443_v16, %v907_v25  ;;  %1763 = vmatprep.mubr.f32.mxu1 %v976_v21 }
 0x2a0   : > { %1764 = vmatmul.mubr.f32.vlgmr.msra.gmra.mrb[16].mxu1 %v977_v23  ;;  %v979_v29 = vmax.f32 %v913_v24, 0.0 }
 0x2a1   : > { %v978_v27 = vmax.f32 %v908_v26, 0.0  ;;  %v1715_v28 = vpop.f32.mrb[20].mxu0 }
 0x2a2   : > { %v923_v30 = vadd.f32 %v1715_v28, %v1443_v16  ;;  %v917_v31 = vpop.f32.mrb[21].mxu0 }
 0x2a3   : > { %v918_v32 = vadd.f32 %v1443_v16, %v917_v31  ;;  %1766 = vmatprep.mubr.f32.mxu1 %v978_v27 }
 0x2a4   : > { %1767 = vmatmul.mubr.f32.gmra.mrb[18].mxu1 %v979_v29  ;;  %v981_v35 = vmax.f32 %v923_v30, 0.0 }
 0x2a5   : > { %v980_v33 = vmax.f32 %v918_v32, 0.0  ;;  %v1718_v34 = vpop.f32.mrb[22].mxu0 }
 0x2a6   : > { %v933_v36 = vadd.f32 %v1718_v34, %v1443_v16  ;;  %v927_v37 = vpop.f32.mrb[23].mxu0 }
 0x2a7   : > { %v928_v38 = vadd.f32 %v1443_v16, %v927_v37  ;;  %1769 = vmatprep.mubr.f32.mxu1 %v980_v33 }
 0x2a8   : > { %1770 = vmatmul.mubr.f32.gmra.mrb[20].mxu1 %v981_v35  ;;  %v983_v41 = vmax.f32 %v933_v36, 0.0 }
 0x2a9   : > { %v982_v39 = vmax.f32 %v928_v38, 0.0  ;;  %v1721_v40 = vpop.f32.mrb[24].mxu0 }
 0x2aa   : > { %v943_v42 = vadd.f32 %v1721_v40, %v1443_v16  ;;  %v937_v43 = vpop.f32.mrb[25].mxu0 }
 0x2ab   : > { %v938_v44 = vadd.f32 %v1443_v16, %v937_v43  ;;  %1772 = vmatprep.mubr.f32.mxu1 %v982_v39 }
 0x2ac   : > { %1773 = vmatmul.mubr.f32.gmra.mrb[22].mxu1 %v983_v41  ;;  %v985_v47 = vmax.f32 %v943_v42, 0.0 }
 0x2ad   : > { %v984_v45 = vmax.f32 %v938_v44, 0.0  ;;  %v1724_v46 = vpop.f32.mrb[26].mxu0 }
 0x2ae   : > { %v953_v48 = vadd.f32 %v1724_v46, %v1443_v16  ;;  %v947_v49 = vpop.f32.mrb[27].mxu0 }
 0x2af   : > { %v948_v50 = vadd.f32 %v1443_v16, %v947_v49  ;;  %1775 = vmatprep.mubr.f32.mxu1 %v984_v45 }
 0x2b0   : > { %1776 = vmatmul.mubr.f32.gmra.mrb[24].mxu1 %v985_v47  ;;  %v987_v53 = vmax.f32 %v953_v48, 0.0 }
 0x2b1   : > { %v986_v51 = vmax.f32 %v948_v50, 0.0  ;;  %v1727_v52 = vpop.f32.mrb[28].mxu0 }
 0x2b2   : > { %v963_v54 = vadd.f32 %v1727_v52, %v1443_v16  ;;  %v957_v55 = vpop.f32.mrb[29].mxu0 }
 0x2b3   : > { %v958_v56 = vadd.f32 %v1443_v16, %v957_v55  ;;  %1778 = vmatprep.mubr.f32.mxu1 %v986_v51 }
 0x2b4   : > { %1779 = vmatmul.mubr.f32.gmra.mrb[26].mxu1 %v987_v53  ;;  %v989_v59 = vmax.f32 %v963_v54, 0.0  ;;  %v1445_v53 = vld [vmem:[%s2343_s10] ss:$0 sm:$0xff] }
 0x2b5   : > { %v988_v57 = vmax.f32 %v958_v56, 0.0  ;;  %v1730_v58 = vpop.f32.mrb[30].mxu0 }
 0x2b6   : > { %v973_v60 = vadd.f32 %v1730_v58, %v1443_v16  ;;  %v967_v61 = vpop.f32.mrb[31].mxu0 }
 0x2b7   : > { %v968_v62 = vadd.f32 %v1443_v16, %v967_v61  ;;  %1781 = vmatprep.mubr.f32.mxu1 %v988_v57 }
 0x2b8   : > { %1782 = vmatmul.mubr.f32.gmra.mrb[28].mxu1 %v989_v59  ;;  %v991_v0 = vmax.f32 %v973_v60, 0.0 }
 0x2b9   : > { %v990_v63 = vmax.f32 %v968_v62, 0.0 }
 0x2bb   : > { %1784 = vmatprep.mubr.f32.mxu1 %v990_v63 }
 0x2bc   : > { %1785 = vmatmul.mubr.f32.gmra.mrb[30].mxu1 %v991_v0 }
 0x373   : > { %v1765_v5 = vpop.f32.mrb[16].mxu1 }
 0x374   : > { %v1087_v6 = vadd.f32 %v1765_v5, %v1444_v4  ;;  %v1081_v7 = vpop.f32.mrb[17].mxu1 }
 0x375   : > { %v1082_v8 = vadd.f32 %v1444_v4, %v1081_v7 }
 0x376   : > { %v1161_v11 = vmax.f32 %v1087_v6, 0.0 }
 0x377   : > { %v1160_v9 = vmax.f32 %v1082_v8, 0.0  ;;  %v1768_v10 = vpop.f32.mrb[18].mxu1 }
 0x378   : > { %v1097_v12 = vadd.f32 %v1768_v10, %v1444_v4  ;;  %v1091_v13 = vpop.f32.mrb[19].mxu1 }
 0x379   : > { %v1092_v14 = vadd.f32 %v1444_v4, %v1091_v13  ;;  %1819 = vmatprep.mubr.f32.mxu0 %v1160_v9 }
 0x37a   : > { %1820 = vmatmul.mubr.f32.vlgmr.msra.gmra.mrb[32].mxu0 %v1161_v11  ;;  %v1163_v17 = vmax.f32 %v1097_v12, 0.0 }
 0x37b   : > { %v1162_v15 = vmax.f32 %v1092_v14, 0.0  ;;  %v1771_v16 = vpop.f32.mrb[20].mxu1 }
 0x37c   : > { %v1107_v18 = vadd.f32 %v1771_v16, %v1444_v4  ;;  %v1101_v19 = vpop.f32.mrb[21].mxu1 }
 0x37d   : > { %v1102_v20 = vadd.f32 %v1444_v4, %v1101_v19  ;;  %1822 = vmatprep.mubr.f32.mxu0 %v1162_v15 }
 0x37e   : > { %1823 = vmatmul.mubr.f32.gmra.mrb[34].mxu0 %v1163_v17  ;;  %v1165_v23 = vmax.f32 %v1107_v18, 0.0 }
 0x37f   : > { %v1164_v21 = vmax.f32 %v1102_v20, 0.0  ;;  %v1774_v22 = vpop.f32.mrb[22].mxu1 }
 0x380   : > { %v1117_v24 = vadd.f32 %v1774_v22, %v1444_v4  ;;  %v1111_v25 = vpop.f32.mrb[23].mxu1 }
 0x381   : > { %v1112_v26 = vadd.f32 %v1444_v4, %v1111_v25  ;;  %1825 = vmatprep.mubr.f32.mxu0 %v1164_v21 }
 0x382   : > { %1826 = vmatmul.mubr.f32.gmra.mrb[36].mxu0 %v1165_v23  ;;  %v1167_v29 = vmax.f32 %v1117_v24, 0.0 }
 0x383   : > { %v1166_v27 = vmax.f32 %v1112_v26, 0.0  ;;  %v1777_v28 = vpop.f32.mrb[24].mxu1 }
 0x384   : > { %v1127_v30 = vadd.f32 %v1777_v28, %v1444_v4  ;;  %v1121_v31 = vpop.f32.mrb[25].mxu1 }
 0x385   : > { %v1122_v32 = vadd.f32 %v1444_v4, %v1121_v31  ;;  %1828 = vmatprep.mubr.f32.mxu0 %v1166_v27 }
 0x386   : > { %1829 = vmatmul.mubr.f32.gmra.mrb[38].mxu0 %v1167_v29  ;;  %v1169_v35 = vmax.f32 %v1127_v30, 0.0 }
 0x387   : > { %v1168_v33 = vmax.f32 %v1122_v32, 0.0  ;;  %v1780_v34 = vpop.f32.mrb[26].mxu1 }
 0x388   : > { %v1137_v36 = vadd.f32 %v1780_v34, %v1444_v4  ;;  %v1131_v37 = vpop.f32.mrb[27].mxu1 }
 0x389   : > { %v1132_v38 = vadd.f32 %v1444_v4, %v1131_v37  ;;  %1831 = vmatprep.mubr.f32.mxu0 %v1168_v33 }
 0x38a   : > { %1832 = vmatmul.mubr.f32.gmra.mrb[40].mxu0 %v1169_v35  ;;  %v1171_v41 = vmax.f32 %v1137_v36, 0.0 }
 0x38b   : > { %v1170_v39 = vmax.f32 %v1132_v38, 0.0  ;;  %v1783_v40 = vpop.f32.mrb[28].mxu1 }
 0x38c   : > { %v1147_v42 = vadd.f32 %v1783_v40, %v1444_v4  ;;  %v1141_v43 = vpop.f32.mrb[29].mxu1 }
 0x38d   : > { %v1142_v44 = vadd.f32 %v1444_v4, %v1141_v43  ;;  %1834 = vmatprep.mubr.f32.mxu0 %v1170_v39 }
 0x38e   : > { %1835 = vmatmul.mubr.f32.gmra.mrb[42].mxu0 %v1171_v41  ;;  %v1173_v47 = vmax.f32 %v1147_v42, 0.0 }
 0x38f   : > { %v1172_v45 = vmax.f32 %v1142_v44, 0.0  ;;  %v1786_v46 = vpop.f32.mrb[30].mxu1 }
 0x390   : > { %v1157_v48 = vadd.f32 %v1786_v46, %v1444_v4  ;;  %v1151_v49 = vpop.f32.mrb[31].mxu1 }
 0x391   : > { %v1152_v50 = vadd.f32 %v1444_v4, %v1151_v49  ;;  %1837 = vmatprep.mubr.f32.mxu0 %v1172_v45 }
 0x392   : > { %1838 = vmatmul.mubr.f32.gmra.mrb[44].mxu0 %v1173_v47  ;;  %v1175_v52 = vmax.f32 %v1157_v48, 0.0 }
 0x393   : > { %v1174_v51 = vmax.f32 %v1152_v50, 0.0 }
 0x395   : > { %1840 = vmatprep.mubr.f32.mxu0 %v1174_v51 }
 0x396   : > { %1841 = vmatmul.mubr.f32.gmra.mrb[46].mxu0 %v1175_v52 }
 0x44d   : > { %v1821_v54 = vpop.f32.mrb[32].mxu0 }
 0x44e   : > { %v1271_v55 = vadd.f32 %v1821_v54, %v1445_v53  ;;  %v1265_v56 = vpop.f32.mrb[33].mxu0 }
 0x44f   : > { %v1266_v57 = vadd.f32 %v1445_v53, %v1265_v56 }
 0x450   : > { %1345 = vst [vmem:[%s2312_s22 + $0x8] sm:$0xff] %v1271_v55 }
 0x451   : > { %1344 = vst [vmem:[%s2312_s22] sm:$0xff] %v1266_v57  ;;  %v1824_v58 = vpop.f32.mrb[34].mxu0 }
 0x452   : > { %v1281_v59 = vadd.f32 %v1824_v58, %v1445_v53  ;;  %v1275_v60 = vpop.f32.mrb[35].mxu0 }
 0x453   : > { %v1276_v61 = vadd.f32 %v1445_v53, %v1275_v60 }
 0x454   : > { %1347 = vst [vmem:[%s2312_s22 + $0x18] sm:$0xff] %v1281_v59 }
 0x455   : > { %1346 = vst [vmem:[%s2312_s22 + $0x10] sm:$0xff] %v1276_v61  ;;  %v1827_v62 = vpop.f32.mrb[36].mxu0 }
 0x456   : > { %v1291_v63 = vadd.f32 %v1827_v62, %v1445_v53  ;;  %v1285_v0 = vpop.f32.mrb[37].mxu0 }
 0x457   : > { %v1286_v1 = vadd.f32 %v1445_v53, %v1285_v0 }
 0x458   : > { %1349 = vst [vmem:[%s2312_s22 + $0x28] sm:$0xff] %v1291_v63 }
 0x459   : > { %1348 = vst [vmem:[%s2312_s22 + $0x20] sm:$0xff] %v1286_v1  ;;  %v1830_v2 = vpop.f32.mrb[38].mxu0 }
 0x45a   : > { %v1301_v3 = vadd.f32 %v1830_v2, %v1445_v53  ;;  %v1295_v4 = vpop.f32.mrb[39].mxu0 }
 0x45b   : > { %v1296_v5 = vadd.f32 %v1445_v53, %v1295_v4 }
 0x45c   : > { %1351 = vst [vmem:[%s2312_s22 + $0x38] sm:$0xff] %v1301_v3 }
 0x45d   : > { %1350 = vst [vmem:[%s2312_s22 + $0x30] sm:$0xff] %v1296_v5  ;;  %v1833_v6 = vpop.f32.mrb[40].mxu0 }
 0x45e   : > { %v1311_v7 = vadd.f32 %v1833_v6, %v1445_v53  ;;  %v1305_v8 = vpop.f32.mrb[41].mxu0 }
 0x45f   : > { %v1306_v9 = vadd.f32 %v1445_v53, %v1305_v8 }
 0x460   : > { %1353 = vst [vmem:[%s2312_s22 + $0x48] sm:$0xff] %v1311_v7 }
 0x461   : > { %1352 = vst [vmem:[%s2312_s22 + $0x40] sm:$0xff] %v1306_v9  ;;  %v1836_v10 = vpop.f32.mrb[42].mxu0 }
 0x462   : > { %v1321_v11 = vadd.f32 %v1836_v10, %v1445_v53  ;;  %v1315_v12 = vpop.f32.mrb[43].mxu0 }
 0x463   : > { %v1316_v13 = vadd.f32 %v1445_v53, %v1315_v12 }
 0x464   : > { %1355 = vst [vmem:[%s2312_s22 + $0x58] sm:$0xff] %v1321_v11 }
 0x465   : > { %1354 = vst [vmem:[%s2312_s22 + $0x50] sm:$0xff] %v1316_v13  ;;  %v1839_v14 = vpop.f32.mrb[44].mxu0 }
 0x466   : > { %v1331_v15 = vadd.f32 %v1839_v14, %v1445_v53  ;;  %v1325_v16 = vpop.f32.mrb[45].mxu0 }
 0x467   : > { %v1326_v17 = vadd.f32 %v1445_v53, %v1325_v16 }
 0x468   : > { %1357 = vst [vmem:[%s2312_s22 + $0x68] sm:$0xff] %v1331_v15 }
 0x469   : > { %1356 = vst [vmem:[%s2312_s22 + $0x60] sm:$0xff] %v1326_v17  ;;  %v1842_v18 = vpop.f32.mrb[46].mxu0 }
 0x46a   : > { %v1341_v19 = vadd.f32 %v1842_v18, %v1445_v53  ;;  %v1335_v20 = vpop.f32.mrb[47].mxu0 }
 0x46b   : > { %v1336_v21 = vadd.f32 %v1445_v53, %v1335_v20 }
 0x46c   : > { %1359 = vst [vmem:[%s2312_s22 + $0x78] sm:$0xff] %v1341_v19 }
 0x46d   : > { %1358 = vst [vmem:[%s2312_s22 + $0x70] sm:$0xff] %v1336_v21 }
 0x46e PF: > { %s21_s17 = sadd.s32 1, %s1985_s17  }
 0x46f   : > { %p18_p4 = scmp.ge.s32.totalorder %s21_s17, 4  }
 0x471   :  { %20 = sbr.rel (!%p18_p4) target bundleno = 1 (0x1), region = 94 }

</bundles_post_ra>
